<compile_context>
chip_gen: v7x
topology: tpu7x:2x2x1
jax: 0.10.0
libtpu: 0.0.40
codegen_flags: <defaults>
</compile_context>

<pallas_src>
import functools

import jax
import jax.numpy as jnp
from jax.experimental import pallas as pl
from jax.experimental.pallas import tpu as pltpu


def _attention_kernel(*refs, num_heads, head_dim, scale, qkv_has_bias,
                      compute_dtype):
    if qkv_has_bias:
        x_ref, wqkv_ref, bqkv_ref, wproj_ref, bproj_ref, o_ref, acc_ref = refs
    else:
        x_ref, wqkv_ref, wproj_ref, bproj_ref, o_ref, acc_ref = refs
        bqkv_ref = None

    bt, n, c = x_ref.shape
    cd = compute_dtype

    # ---- QKV projection as a batched matmul (no (bt*n, c) flatten: avoids
    # (8,128) relayout copies when n % 8 != 0).  bf16 operands, f32 accum.
    x_c = x_ref[...].astype(cd)
    qkv = jnp.einsum("bnc,cd->bnd", x_c, wqkv_ref[...].astype(cd),
                     preferred_element_type=jnp.float32)          # (bt,n,3c) f32
    if qkv_has_bias:
        qkv = qkv + bqkv_ref[...].astype(jnp.float32)

    # Split q/k/v once; fold the 1/sqrt(head_dim) scale into q (n*c elements
    # instead of n*n score elements) and cast to the MXU compute dtype once.
    q_all = (qkv[:, :, 0 * c:1 * c] * scale).astype(cd)
    k_all = qkv[:, :, 1 * c:2 * c].astype(cd)
    v_all = qkv[:, :, 2 * c:3 * c].astype(cd)

    # ---- Per-head scaled-dot-product attention.  Static loop over the small
    # head count; each head's output is written straight into the f32 VMEM
    # scratch at its static channel offset (no lane-axis concat; heads retire
    # immediately, keeping vreg/VMEM pressure low).
    for h in range(num_heads):
        lo = h * head_dim
        q = q_all[:, :, lo:lo + head_dim]
        k = k_all[:, :, lo:lo + head_dim]
        v = v_all[:, :, lo:lo + head_dim]

        s = jnp.einsum("bqd,bkd->bqk", q, k,
                       preferred_element_type=jnp.float32)        # (bt,n,n) f32
        # Numerically stable softmax in f32; EUP approx reciprocal replaces
        # the per-element divide on the score matrix.
        s = s - jnp.max(s, axis=-1, keepdims=True)
        p = jnp.exp(s)
        p = p * pl.reciprocal(jnp.sum(p, axis=-1, keepdims=True), approx=True)

        acc_ref[:, :, lo:lo + head_dim] = jnp.einsum(
            "bqk,bkd->bqd", p.astype(cd), v,
            preferred_element_type=jnp.float32)

    # ---- Output projection from the scratch, then bias.
    y = jnp.einsum("bnc,cd->bnd", acc_ref[...].astype(cd),
                   wproj_ref[...].astype(cd),
                   preferred_element_type=jnp.float32)
    y = y + bproj_ref[...].astype(jnp.float32)                    # (1,c) bcast
    o_ref[...] = y.astype(o_ref.dtype)


def _estimate_vmem_bytes(b_tile, N, C, x_bytes, out_bytes, w_bytes, cd_bytes,
                         qkv_has_bias):
    """Rough per-step working-set estimate (bytes) used for tile selection."""
    rows = b_tile * N
    tile_io = rows * C * (x_bytes + out_bytes) * 2          # x/out, double-buffered
    weights = (3 * C * C + C * C) * w_bytes                 # single-buffered weights
    weights += (3 * C * 4 if qkv_has_bias else 0) + C * 4   # f32 biases
    scratch = rows * C * 4                                  # head-output scratch (f32)
    qkv_tmp = rows * 3 * C * (4 + cd_bytes)                 # f32 qkv + cd q/k/v copies
    score = rows * N * 4 * 2                                # s and p (f32, one head)
    return tile_io + weights + scratch + qkv_tmp + score


def attention(x, w_qkv, b_qkv, w_proj, b_proj, *, num_heads,
              b_tile=None, compute_dtype=jnp.bfloat16):
    """Fused multi-head attention forward.

    x:(B,N,C), w_qkv:(C,3C), b_qkv:(3C,) or None, w_proj:(C,C), b_proj:(C,).
    """
    B, N, C = x.shape
    assert C % num_heads == 0, "dim must be divisible by num_heads"
    head_dim = C // num_heads
    scale = float(head_dim) ** -0.5
    qkv_has_bias = b_qkv is not None

    # Weights stay VMEM-resident in the compute dtype (bf16 halves resident
    # VMEM and the one-time DMA); biases stay f32 for the f32 accumulate.
    w_qkv = w_qkv.astype(compute_dtype)
    w_proj = w_proj.astype(compute_dtype)
    b_proj = b_proj.astype(jnp.float32).reshape(1, C)
    if qkv_has_bias:
        b_qkv = b_qkv.astype(jnp.float32).reshape(1, 3 * C)

    x_bytes = x.dtype.itemsize
    out_bytes = x.dtype.itemsize
    w_bytes = jnp.dtype(compute_dtype).itemsize
    vmem_budget = 48 << 20           # safe working-set target on v5e/v6e/v7x

    est = functools.partial(_estimate_vmem_bytes, N=N, C=C, x_bytes=x_bytes,
                            out_bytes=out_bytes, w_bytes=w_bytes,
                            cd_bytes=w_bytes, qkv_has_bias=qkv_has_bias)

    if b_tile is None:
        # Fold batch elements per grid step: target ~512 flattened rows
        # (near the HBM-roofline knee) within the VMEM budget, while keeping
        # >= 2 grid steps so dimension_semantics=("parallel",) can shard
        # across TensorCores (important on 2-TC v7x).
        target_rows = 512
        b_tile = 1
        for d in range(B, 0, -1):
            if B % d:
                continue
            if d > 1 and d * N > target_rows:
                continue
            if d > 1 and est(d) > vmem_budget:
                continue
            b_tile = d
            break
        if B >= 2 and B // b_tile < 2:
            for d in range(B // 2, 0, -1):
                if B % d == 0 and est(d) <= vmem_budget:
                    b_tile = d
                    break
    assert B % b_tile == 0
    grid = (B // b_tile,)

    # Explicit VMEM budget (with headroom) so the b_tile choice is safe on
    # v5e's 16 MiB default scoped limit and within v7x's 64 MiB physical VMEM.
    vmem_limit = int(min(max(est(b_tile) * 3 // 2 + (4 << 20), 32 << 20),
                         64 << 20))

    kernel = functools.partial(
        _attention_kernel, num_heads=num_heads, head_dim=head_dim,
        scale=scale, qkv_has_bias=qkv_has_bias, compute_dtype=compute_dtype)

    # Constant-index_map operands never re-fetch: single-buffer them instead
    # of paying 2x VMEM for dead double-buffers.
    resident = dict(pipeline_mode=pl.Buffered(1))

    in_specs = [
        pl.BlockSpec((b_tile, N, C), lambda i: (i, 0, 0)),        # x (batch tile)
        pl.BlockSpec((C, 3 * C), lambda i: (0, 0), **resident),   # w_qkv
    ]
    inputs = [x, w_qkv]
    if qkv_has_bias:
        in_specs.append(pl.BlockSpec((1, 3 * C), lambda i: (0, 0), **resident))
        inputs.append(b_qkv)
    in_specs += [
        pl.BlockSpec((C, C), lambda i: (0, 0), **resident),       # w_proj
        pl.BlockSpec((1, C), lambda i: (0, 0), **resident),       # b_proj
    ]
    inputs += [w_proj, b_proj]

    flops = (2 * B * N * C * (3 * C)      # qkv projection
             + 4 * B * N * N * C          # q@k^T and p@v over all heads
             + 2 * B * N * C * C)         # output projection
    bytes_accessed = (2 * x.size * x_bytes
                      + w_qkv.size * w_qkv.dtype.itemsize
                      + w_proj.size * w_proj.dtype.itemsize
                      + (b_qkv.size * b_qkv.dtype.itemsize if qkv_has_bias else 0)
                      + b_proj.size * b_proj.dtype.itemsize)

    return pl.pallas_call(
        kernel,
        out_shape=jax.ShapeDtypeStruct((B, N, C), x.dtype),
        grid_spec=pltpu.PrefetchScalarGridSpec(
            num_scalar_prefetch=0,
            grid=grid,
            in_specs=in_specs,
            out_specs=pl.BlockSpec((b_tile, N, C), lambda i: (i, 0, 0)),
            scratch_shapes=[pltpu.VMEM((b_tile, N, C), jnp.float32)],
        ),
        compiler_params=pltpu.CompilerParams(
            dimension_semantics=("parallel",),
            vmem_limit_bytes=vmem_limit),
        cost_estimate=pl.CostEstimate(
            flops=flops,
            transcendentals=B * num_heads * N * (N + 1),
            bytes_accessed=bytes_accessed),
    )(*inputs)


def attention_ref(x, w_qkv, b_qkv, w_proj, b_proj, num_heads):
    """Pure-JAX f32 reference mirroring the PyTorch module's default path."""
    B, N, C = x.shape
    hd = C // num_heads
    scale = float(hd) ** -0.5
    qkv = jnp.einsum("bnc,cd->bnd", x, w_qkv)
    if b_qkv is not None:
        qkv = qkv + b_qkv
    qkv = qkv.reshape(B, N, 3, num_heads, hd).transpose(2, 0, 3, 1, 4)
    q, k, v = qkv[0], qkv[1], qkv[2]                       # (B, H, N, hd)
    attn = jnp.einsum("bhqd,bhkd->bhqk", q, k) * scale
    attn = jax.nn.softmax(attn, axis=-1)
    out = jnp.einsum("bhqk,bhkd->bhqd", attn, v)
    out = out.transpose(0, 2, 1, 3).reshape(B, N, C)
    return jnp.einsum("bnc,cd->bnd", out, w_proj) + b_proj


if __name__ == "__main__":
    # Small shapes consistent with the module: batch=2, seq=8, num_heads=3,
    # head_dim=16 -> dim=48.  qkv_bias=False (module default).
    B, N, num_heads, head_dim = 2, 8, 3, 16
    C = num_heads * head_dim

    key = jax.random.PRNGKey(0)
    kx, kw1, kw2, kb2 = jax.random.split(key, 4)
    x = jax.random.normal(kx, (B, N, C), dtype=jnp.float32)
    w_qkv = jax.random.normal(kw1, (C, 3 * C), dtype=jnp.float32) * 0.1
    w_proj = jax.random.normal(kw2, (C, C), dtype=jnp.float32) * 0.1
    b_proj = jax.random.normal(kb2, (C,), dtype=jnp.float32) * 0.1
    b_qkv = None  # qkv_bias=False

    out = attention(x, w_qkv, b_qkv, w_proj, b_proj, num_heads=num_heads)
    out = jax.block_until_ready(out)

    ref = attention_ref(x, w_qkv, b_qkv, w_proj, b_proj, num_heads)
    assert out.shape == (B, N, C)
    # bf16 MXU compute (f32 accumulation) + EUP approx reciprocal -> loosened
    # tolerance vs the pure-f32 reference.
    assert jnp.allclose(out, ref, atol=5e-2, rtol=5e-2), "mismatch vs reference"

    print("KERNEL_OK")
</pallas_src>

<mosaic_0001>
module attributes {stable_mosaic.version = 11 : i64} {
  func.func @_attention_kernel(%arg0: i32, %arg1: memref<1x8x48xf32, #tpu.memory_space<vmem>>, %arg2: memref<48x144xbf16, #tpu.memory_space<vmem>>, %arg3: memref<48x48xbf16, #tpu.memory_space<vmem>>, %arg4: memref<1x48xf32, #tpu.memory_space<vmem>>, %arg5: memref<1x8x48xf32, #tpu.memory_space<vmem>>, %arg6: memref<1x8x48xf32, #tpu.memory_space<vmem>>) attributes {dimension_semantics = [#tpu.dimension_semantics<parallel>], iteration_bounds = array<i64: 2>, scalar_prefetch = 0 : i64, scratch_operands = 1 : i64, tpu.core_type = #tpu.core_type<tc>, window_params = [{transform_indices = @transform_0, window_bounds = array<i64: 1, 8, 48>}, {pipeline_mode = #tpu.pipeline_mode<synchronous>, transform_indices = @transform_1, window_bounds = array<i64: 48, 144>}, {pipeline_mode = #tpu.pipeline_mode<synchronous>, transform_indices = @transform_2, window_bounds = array<i64: 48, 48>}, {pipeline_mode = #tpu.pipeline_mode<synchronous>, transform_indices = @transform_3, window_bounds = array<i64: 1, 48>}, {transform_indices = @transform_4, window_bounds = array<i64: 1, 8, 48>}]} {
    %c0 = arith.constant 0 : index
    %c0_0 = arith.constant 0 : index
    %c0_1 = arith.constant 0 : index
    %0 = vector.load %arg1[%c0, %c0_0, %c0_1] : memref<1x8x48xf32, #tpu.memory_space<vmem>>, vector<1x8x48xf32>
    %1 = arith.truncf %0 : vector<1x8x48xf32> to vector<1x8x48xbf16>
    %c0_2 = arith.constant 0 : index
    %c0_3 = arith.constant 0 : index
    %2 = vector.load %arg2[%c0_2, %c0_3] : memref<48x144xbf16, #tpu.memory_space<vmem>>, vector<48x144xbf16>
    "tpu.trace_start"() <{level = 10 : i32, message = "bnc,cd->bnd"}> : () -> ()
    %cst = arith.constant dense<0.000000e+00> : vector<1x8x144xf32>
    %3 = tpu.matmul %1, %2, %cst {dimension_numbers = #tpu.dot_dimension_numbers<[2], [0], [0, 1], [1], [0, 0, 0, 1, 1, 1], [], []>} : vector<1x8x48xbf16>, vector<48x144xbf16>, vector<1x8x144xf32> -> vector<1x8x144xf32>
    "tpu.trace_stop"() : () -> ()
    %4 = vector.extract_strided_slice %3 {offsets = [0, 0, 0], sizes = [1, 8, 48], strides = [1, 1, 1]} : vector<1x8x144xf32> to vector<1x8x48xf32>
    %cst_4 = arith.constant 2.500000e-01 : f32
    %5 = vector.broadcast %cst_4 : f32 to vector<1x8x48xf32>
    %6 = arith.mulf %4, %5 : vector<1x8x48xf32>
    %7 = arith.truncf %6 : vector<1x8x48xf32> to vector<1x8x48xbf16>
    %8 = vector.extract_strided_slice %3 {offsets = [0, 0, 48], sizes = [1, 8, 48], strides = [1, 1, 1]} : vector<1x8x144xf32> to vector<1x8x48xf32>
    %9 = arith.truncf %8 : vector<1x8x48xf32> to vector<1x8x48xbf16>
    %10 = vector.extract_strided_slice %3 {offsets = [0, 0, 96], sizes = [1, 8, 48], strides = [1, 1, 1]} : vector<1x8x144xf32> to vector<1x8x48xf32>
    %11 = arith.truncf %10 : vector<1x8x48xf32> to vector<1x8x48xbf16>
    %12 = vector.extract_strided_slice %7 {offsets = [0, 0, 0], sizes = [1, 8, 16], strides = [1, 1, 1]} : vector<1x8x48xbf16> to vector<1x8x16xbf16>
    %13 = vector.extract_strided_slice %9 {offsets = [0, 0, 0], sizes = [1, 8, 16], strides = [1, 1, 1]} : vector<1x8x48xbf16> to vector<1x8x16xbf16>
    %14 = vector.extract_strided_slice %11 {offsets = [0, 0, 0], sizes = [1, 8, 16], strides = [1, 1, 1]} : vector<1x8x48xbf16> to vector<1x8x16xbf16>
    "tpu.trace_start"() <{level = 10 : i32, message = "bqd,bkd->bqk"}> : () -> ()
    %cst_5 = arith.constant dense<0.000000e+00> : vector<1x8x8xf32>
    %15 = tpu.matmul %12, %13, %cst_5 {dimension_numbers = #tpu.dot_dimension_numbers<[2], [2], [1], [1], [0, 0, 0, 1, 1, 1], [0], [0]>} : vector<1x8x16xbf16>, vector<1x8x16xbf16>, vector<1x8x8xf32> -> vector<1x8x8xf32>
    "tpu.trace_stop"() : () -> ()
    %cst_6 = arith.constant dense<0xFF800000> : vector<1x8xf32>
    %16 = vector.multi_reduction <maximumf>, %15, %cst_6 [2] : vector<1x8x8xf32> to vector<1x8xf32>
    %17 = vector.shape_cast %16 : vector<1x8xf32> to vector<1x8x1xf32>
    %18 = vector.broadcast %17 : vector<1x8x1xf32> to vector<1x8x8xf32>
    %19 = arith.subf %15, %18 : vector<1x8x8xf32>
    %20 = math.exp %19 : vector<1x8x8xf32>
    %cst_7 = arith.constant dense<0.000000e+00> : vector<1x8xf32>
    %21 = vector.multi_reduction <add>, %20, %cst_7 [2] : vector<1x8x8xf32> to vector<1x8xf32>
    %22 = vector.shape_cast %21 : vector<1x8xf32> to vector<1x8x1xf32>
    %23 = tpu.reciprocal %22 {approx = true} : vector<1x8x1xf32> -> vector<1x8x1xf32>
    %24 = vector.broadcast %23 : vector<1x8x1xf32> to vector<1x8x8xf32>
    %25 = arith.mulf %20, %24 : vector<1x8x8xf32>
    %26 = arith.truncf %25 : vector<1x8x8xf32> to vector<1x8x8xbf16>
    "tpu.trace_start"() <{level = 10 : i32, message = "bqk,bkd->bqd"}> : () -> ()
    %cst_8 = arith.constant dense<0.000000e+00> : vector<1x8x16xf32>
    %27 = tpu.matmul %26, %14, %cst_8 {dimension_numbers = #tpu.dot_dimension_numbers<[2], [1], [1], [2], [0, 0, 0, 1, 1, 2], [0], [0]>} : vector<1x8x8xbf16>, vector<1x8x16xbf16>, vector<1x8x16xf32> -> vector<1x8x16xf32>
    "tpu.trace_stop"() : () -> ()
    %c0_9 = arith.constant 0 : index
    %c0_10 = arith.constant 0 : index
    %c0_11 = arith.constant 0 : index
    %28 = vector.load %arg6[%c0_9, %c0_10, %c0_11] : memref<1x8x48xf32, #tpu.memory_space<vmem>>, vector<1x8x16xf32>
    tpu.vector_store %arg6[%c0_9, %c0_10, %c0_11], %27 {strides = array<i32>} : memref<1x8x48xf32, #tpu.memory_space<vmem>>, vector<1x8x16xf32>,
    %29 = vector.extract_strided_slice %7 {offsets = [0, 0, 16], sizes = [1, 8, 16], strides = [1, 1, 1]} : vector<1x8x48xbf16> to vector<1x8x16xbf16>
    %30 = vector.extract_strided_slice %9 {offsets = [0, 0, 16], sizes = [1, 8, 16], strides = [1, 1, 1]} : vector<1x8x48xbf16> to vector<1x8x16xbf16>
    %31 = vector.extract_strided_slice %11 {offsets = [0, 0, 16], sizes = [1, 8, 16], strides = [1, 1, 1]} : vector<1x8x48xbf16> to vector<1x8x16xbf16>
    "tpu.trace_start"() <{level = 10 : i32, message = "bqd,bkd->bqk"}> : () -> ()
    %cst_12 = arith.constant dense<0.000000e+00> : vector<1x8x8xf32>
    %32 = tpu.matmul %29, %30, %cst_12 {dimension_numbers = #tpu.dot_dimension_numbers<[2], [2], [1], [1], [0, 0, 0, 1, 1, 1], [0], [0]>} : vector<1x8x16xbf16>, vector<1x8x16xbf16>, vector<1x8x8xf32> -> vector<1x8x8xf32>
    "tpu.trace_stop"() : () -> ()
    %cst_13 = arith.constant dense<0xFF800000> : vector<1x8xf32>
    %33 = vector.multi_reduction <maximumf>, %32, %cst_13 [2] : vector<1x8x8xf32> to vector<1x8xf32>
    %34 = vector.shape_cast %33 : vector<1x8xf32> to vector<1x8x1xf32>
    %35 = vector.broadcast %34 : vector<1x8x1xf32> to vector<1x8x8xf32>
    %36 = arith.subf %32, %35 : vector<1x8x8xf32>
    %37 = math.exp %36 : vector<1x8x8xf32>
    %cst_14 = arith.constant dense<0.000000e+00> : vector<1x8xf32>
    %38 = vector.multi_reduction <add>, %37, %cst_14 [2] : vector<1x8x8xf32> to vector<1x8xf32>
    %39 = vector.shape_cast %38 : vector<1x8xf32> to vector<1x8x1xf32>
    %40 = tpu.reciprocal %39 {approx = true} : vector<1x8x1xf32> -> vector<1x8x1xf32>
    %41 = vector.broadcast %40 : vector<1x8x1xf32> to vector<1x8x8xf32>
    %42 = arith.mulf %37, %41 : vector<1x8x8xf32>
    %43 = arith.truncf %42 : vector<1x8x8xf32> to vector<1x8x8xbf16>
    "tpu.trace_start"() <{level = 10 : i32, message = "bqk,bkd->bqd"}> : () -> ()
    %cst_15 = arith.constant dense<0.000000e+00> : vector<1x8x16xf32>
    %44 = tpu.matmul %43, %31, %cst_15 {dimension_numbers = #tpu.dot_dimension_numbers<[2], [1], [1], [2], [0, 0, 0, 1, 1, 2], [0], [0]>} : vector<1x8x8xbf16>, vector<1x8x16xbf16>, vector<1x8x16xf32> -> vector<1x8x16xf32>
    "tpu.trace_stop"() : () -> ()
    %c0_16 = arith.constant 0 : index
    %c0_17 = arith.constant 0 : index
    %c16 = arith.constant 16 : index
    %45 = vector.load %arg6[%c0_16, %c0_17, %c16] : memref<1x8x48xf32, #tpu.memory_space<vmem>>, vector<1x8x16xf32>
    tpu.vector_store %arg6[%c0_16, %c0_17, %c16], %44 {strides = array<i32>} : memref<1x8x48xf32, #tpu.memory_space<vmem>>, vector<1x8x16xf32>,
    %46 = vector.extract_strided_slice %7 {offsets = [0, 0, 32], sizes = [1, 8, 16], strides = [1, 1, 1]} : vector<1x8x48xbf16> to vector<1x8x16xbf16>
    %47 = vector.extract_strided_slice %9 {offsets = [0, 0, 32], sizes = [1, 8, 16], strides = [1, 1, 1]} : vector<1x8x48xbf16> to vector<1x8x16xbf16>
    %48 = vector.extract_strided_slice %11 {offsets = [0, 0, 32], sizes = [1, 8, 16], strides = [1, 1, 1]} : vector<1x8x48xbf16> to vector<1x8x16xbf16>
    "tpu.trace_start"() <{level = 10 : i32, message = "bqd,bkd->bqk"}> : () -> ()
    %cst_18 = arith.constant dense<0.000000e+00> : vector<1x8x8xf32>
    %49 = tpu.matmul %46, %47, %cst_18 {dimension_numbers = #tpu.dot_dimension_numbers<[2], [2], [1], [1], [0, 0, 0, 1, 1, 1], [0], [0]>} : vector<1x8x16xbf16>, vector<1x8x16xbf16>, vector<1x8x8xf32> -> vector<1x8x8xf32>
    "tpu.trace_stop"() : () -> ()
    %cst_19 = arith.constant dense<0xFF800000> : vector<1x8xf32>
    %50 = vector.multi_reduction <maximumf>, %49, %cst_19 [2] : vector<1x8x8xf32> to vector<1x8xf32>
    %51 = vector.shape_cast %50 : vector<1x8xf32> to vector<1x8x1xf32>
    %52 = vector.broadcast %51 : vector<1x8x1xf32> to vector<1x8x8xf32>
    %53 = arith.subf %49, %52 : vector<1x8x8xf32>
    %54 = math.exp %53 : vector<1x8x8xf32>
    %cst_20 = arith.constant dense<0.000000e+00> : vector<1x8xf32>
    %55 = vector.multi_reduction <add>, %54, %cst_20 [2] : vector<1x8x8xf32> to vector<1x8xf32>
    %56 = vector.shape_cast %55 : vector<1x8xf32> to vector<1x8x1xf32>
    %57 = tpu.reciprocal %56 {approx = true} : vector<1x8x1xf32> -> vector<1x8x1xf32>
    %58 = vector.broadcast %57 : vector<1x8x1xf32> to vector<1x8x8xf32>
    %59 = arith.mulf %54, %58 : vector<1x8x8xf32>
    %60 = arith.truncf %59 : vector<1x8x8xf32> to vector<1x8x8xbf16>
    "tpu.trace_start"() <{level = 10 : i32, message = "bqk,bkd->bqd"}> : () -> ()
    %cst_21 = arith.constant dense<0.000000e+00> : vector<1x8x16xf32>
    %61 = tpu.matmul %60, %48, %cst_21 {dimension_numbers = #tpu.dot_dimension_numbers<[2], [1], [1], [2], [0, 0, 0, 1, 1, 2], [0], [0]>} : vector<1x8x8xbf16>, vector<1x8x16xbf16>, vector<1x8x16xf32> -> vector<1x8x16xf32>
    "tpu.trace_stop"() : () -> ()
    %c0_22 = arith.constant 0 : index
    %c0_23 = arith.constant 0 : index
    %c32 = arith.constant 32 : index
    %62 = vector.load %arg6[%c0_22, %c0_23, %c32] : memref<1x8x48xf32, #tpu.memory_space<vmem>>, vector<1x8x16xf32>
    tpu.vector_store %arg6[%c0_22, %c0_23, %c32], %61 {strides = array<i32>} : memref<1x8x48xf32, #tpu.memory_space<vmem>>, vector<1x8x16xf32>,
    %c0_24 = arith.constant 0 : index
    %c0_25 = arith.constant 0 : index
    %c0_26 = arith.constant 0 : index
    %63 = vector.load %arg6[%c0_24, %c0_25, %c0_26] : memref<1x8x48xf32, #tpu.memory_space<vmem>>, vector<1x8x48xf32>
    %64 = arith.truncf %63 : vector<1x8x48xf32> to vector<1x8x48xbf16>
    %c0_27 = arith.constant 0 : index
    %c0_28 = arith.constant 0 : index
    %65 = vector.load %arg3[%c0_27, %c0_28] : memref<48x48xbf16, #tpu.memory_space<vmem>>, vector<48x48xbf16>
    "tpu.trace_start"() <{level = 10 : i32, message = "bnc,cd->bnd"}> : () -> ()
    %cst_29 = arith.constant dense<0.000000e+00> : vector<1x8x48xf32>
    %66 = tpu.matmul %64, %65, %cst_29 {dimension_numbers = #tpu.dot_dimension_numbers<[2], [0], [0, 1], [1], [0, 0, 0, 1, 1, 1], [], []>} : vector<1x8x48xbf16>, vector<48x48xbf16>, vector<1x8x48xf32> -> vector<1x8x48xf32>
    "tpu.trace_stop"() : () -> ()
    %c0_30 = arith.constant 0 : index
    %c0_31 = arith.constant 0 : index
    %67 = vector.load %arg4[%c0_30, %c0_31] : memref<1x48xf32, #tpu.memory_space<vmem>>, vector<1x48xf32>
    %68 = vector.shape_cast %67 : vector<1x48xf32> to vector<1x1x48xf32>
    %69 = vector.broadcast %68 : vector<1x1x48xf32> to vector<1x8x48xf32>
    %70 = arith.addf %66, %69 : vector<1x8x48xf32>
    %c0_32 = arith.constant 0 : index
    %c0_33 = arith.constant 0 : index
    %c0_34 = arith.constant 0 : index
    %71 = vector.load %arg5[%c0_32, %c0_33, %c0_34] : memref<1x8x48xf32, #tpu.memory_space<vmem>>, vector<1x8x48xf32>
    tpu.vector_store %arg5[%c0_32, %c0_33, %c0_34], %70 {strides = array<i32>} : memref<1x8x48xf32, #tpu.memory_space<vmem>>, vector<1x8x48xf32>,
    return
  }
  func.func @transform_0(%arg0: i32) -> (i32, i32, i32) {
    %c0_i32 = arith.constant 0 : i32
    %c0_i32_0 = arith.constant 0 : i32
    %c0_i32_1 = arith.constant 0 : i32
    return %arg0, %c0_i32, %c0_i32_0 : i32, i32, i32
  }
  func.func @transform_1(%arg0: i32) -> (i32, i32) {
    %c0_i32 = arith.constant 0 : i32
    %c0_i32_0 = arith.constant 0 : i32
    %c0_i32_1 = arith.constant 0 : i32
    return %c0_i32, %c0_i32_0 : i32, i32
  }
  func.func @transform_2(%arg0: i32) -> (i32, i32) {
    %c0_i32 = arith.constant 0 : i32
    %c0_i32_0 = arith.constant 0 : i32
    %c0_i32_1 = arith.constant 0 : i32
    return %c0_i32, %c0_i32_0 : i32, i32
  }
  func.func @transform_3(%arg0: i32) -> (i32, i32) {
    %c0_i32 = arith.constant 0 : i32
    %c0_i32_0 = arith.constant 0 : i32
    %c0_i32_1 = arith.constant 0 : i32
    return %c0_i32, %c0_i32_0 : i32, i32
  }
  func.func @transform_4(%arg0: i32) -> (i32, i32, i32) {
    %c0_i32 = arith.constant 0 : i32
    %c0_i32_0 = arith.constant 0 : i32
    %c0_i32_1 = arith.constant 0 : i32
    return %arg0, %c0_i32, %c0_i32_0 : i32, i32, i32
  }
}

</mosaic_0001>

<bundles_post_ra>
// kernel: tpu_custom_call.1
= control target key start
LH: loop header
LB: loop body
LE: loop exit
PB: predicated region body
PF: predicated region fallthrough
CT: control target
= control target key end

     0   :  { %9 = vsyncpa [#allocation4], 0  ;;  %s1552_s0 = inlined_call_operand.hbm [shape: f32[2,8,48], index: 0, kind: input, shape index: {}]   ;;  %s1553_s1 = inlined_call_operand.hbm [shape: bf16[48,144], index: 1, kind: input, shape index: {}]   ;;  %s1554_s2 = inlined_call_operand.hbm [shape: bf16[48,48], index: 2, kind: input, shape index: {}]   ;;  %s1555_s3 = inlined_call_operand.vmem [shape: f32[1,48], index: 3, kind: input, shape index: {}]   ;;  %s1556_s4 = inlined_call_operand.hbm [shape: f32[2,8,48], index: 4, kind: output, shape index: {}]  }
   0x1   :  { %11 = vsyncpa [#allocation4 + $0x1], 0 }
   0x2   :  { %12 = vsyncpa [#allocation7], 0 }
   0x3   :  { %13 = vsyncpa [#allocation5], 0 }
   0x4   :  { %15 = vsyncpa [#allocation5 + $0x1], 0  ;;  %s1256_s15 = smov 0   ;;  %s1258_s16 = smov 0  }
   0x5   :  { %s1260_s17 = smov 0   ;;  %s1262_s18 = smov 0  }
   0x6 LB: > { %s1277_s19 = sadd.s32 4294967295, %s1211_s18   ;;  %s854_s20 = sadd.s32 4294967294, %s1211_s18   ;;  %s1211_s18 = sphi %s1262_s18, %s1576_s18   ;;  %s1207_s17 = sphi %s1260_s17, %s1575_s17   ;;  %s1203_s16 = sphi %s1258_s16, %s1574_s16   ;;  %s1199_s15 = sphi %s1256_s15, %s1573_s15  }
   0x7   : > { %p41_p0 = scmp.ne.s32.totalorder %s1203_s16, %s1199_s15  ;;  %p1557_p1 = scmp.eq.s32.totalorder %s1277_s19, 0 }
   0x8   : > { %p134_p3 = scmp.eq.s32.totalorder %s854_s20, 1  ;;  %p855_p5 = scmp.ge.s32.totalorder %s1211_s18, 1 }
   0x9   : > { %p1286_p4 = por %p1557_p1, %p41_p0  ;;  %p141_p7 = scmp.lt.s32.totalorder %s1211_s18, 3 }
   0xa   : > { %p1291_p6 = por %p134_p3, %p41_p0  ;;  %s1213_s24 = smov [#allocation6]  }
   0xb   : > { %s1560_s21 = scalar_select %p1286_p4, 1, 0 }
   0xc   : > { %s1561_s22 = scalar_select %p1291_p6, 1, 0 }
   0xd   : > { %p1296_p8 = pnand %p855_p5, %p141_p7  ;;  %s153_s25 = sshll.u32 %s1213_s24, 4  ;;  %s1300_s25 = int_to_ptr.vmem [resolvable:$true] %s153_s25 }
   0xe   : > { %s1214_s27 = smov [#allocation8]   ;;  %s1055_s5 = scalar_lea.hbm %s1553_s1, 768 }
   0xf   : > { %p962_p9 = pneg %p1296_p8  ;;  %s166_s28 = sshll.u32 %s1214_s27, 4  ;;  %s1311_s28 = int_to_ptr.vmem [resolvable:$true] %s166_s28 }
  0x10   : > { %p1056_p12 = scmp.ne.s32.totalorder %s1553_s1, %s1055_s5  ;;  %p1062_p5 = scmp.lt.u32.totalorder %s1055_s5, %s1553_s1 }
  0x11   : > { %p1307_p11 = pnand %p962_p9, %p1557_p1 }
  0x13   : > { %p1057_p13 = pneg %p1307_p11 }
  0x15   : > { %p1058_p0 = pnand %p1057_p13, %p1056_p12 }
  0x17   : > { %p1059_p3 = pneg %p1058_p0 }
  0x19   : > { %p1064_p7 = pnand %p1062_p5, %p1059_p3 }
  0x1b   : > { %1067 = shalt.err (!%p1064_p7)
}
  0x1c   : > { %s1068_s10 = scalar_lea.vmem %s1300_s25, 768  ;;  %p1076_p2 = scmp.lt.s32.totalorder %s1300_s25, %s1300_s25 }
  0x1d   : > { %p1069_p9 = scmp.ne.s32.totalorder %s1300_s25, %s1068_s10  ;;  %p1077_p12 = scmp.lt.s32.totalorder %s1068_s10, %s1068_s10 }
  0x1f   : > { %p1071_p10 = pnand %p1069_p9, %p1057_p13  ;;  %p1078_p0 = por %p1077_p12, %p1076_p2 }
  0x21   : > { %p1072_p1 = pneg %p1071_p10 }
  0x23   : > { %p1079_p6 = pnand %p1078_p0, %p1072_p1 }
  0x25   : > { %1082 = shalt.err (!%p1079_p6)
}
  0x26   : > { %s1215_s11 = smov 128   ;;  %s1216_s12 = smov 8  }
  0x27   : > { %965 = dma.hbm_to_vmem [thread:$0]  (!%p1307_p11), %s1553_s1, 768, %s1300_s25, [#allocation7], %s1215_s11, %s1215_s11, %s1216_s12  }
  0x28   : > { %s1083_s27 = scalar_lea.hbm %s1554_s2, 384 }
  0x29   : > { %p1084_p2 = scmp.ne.s32.totalorder %s1554_s2, %s1083_s27  ;;  %p1090_p10 = scmp.lt.u32.totalorder %s1083_s27, %s1554_s2 }
  0x2b   : > { %p1086_p1 = pnand %p1084_p2, %p1057_p13 }
  0x2d   : > { %p1087_p6 = pneg %p1086_p1 }
  0x2f   : > { %p1092_p3 = pnand %p1090_p10, %p1087_p6 }
  0x31   : > { %1095 = shalt.err (!%p1092_p3)
}
  0x32   : > { %s1096_s25 = scalar_lea.vmem %s1311_s28, 384  ;;  %p1104_p12 = scmp.lt.s32.totalorder %s1311_s28, %s1311_s28 }
  0x33   : > { %p1097_p5 = scmp.ne.s32.totalorder %s1311_s28, %s1096_s25  ;;  %p1105_p0 = scmp.lt.s32.totalorder %s1096_s25, %s1096_s25 }
  0x35   : > { %p1099_p7 = pnand %p1097_p5, %p1057_p13  ;;  %p1106_p2 = por %p1105_p0, %p1104_p12 }
  0x37   : > { %p1100_p9 = pneg %p1099_p7 }
  0x39   : > { %p1107_p1 = pnand %p1106_p2, %p1100_p9 }
  0x3b   : > { %1110 = shalt.err (!%p1107_p1)
}
  0x3c   : > { %s1217_s7 = smov 64   ;;  %s1218_s8 = smov 4  }
  0x3d   : > { %968 = dma.hbm_to_vmem [thread:$0]  (!%p1307_p11), %s1554_s2, 384, %s1311_s28, [#allocation7], %s1217_s7, %s1217_s7, %s1218_s8  }
  0x3e   : > { %s1366_s11 = sadd.s32 1, %s1211_s18   ;;  %s28_s13 = sadd.s32 1, %s1207_s17 }
  0x3f   : > { %s25_s12 = ssub.s32 %s1211_s18, %s1366_s11  ;;  %p35_p6 = scmp.ne.s32.totalorder %s1207_s17, %s1203_s16 }
  0x40   : > { %p26_p13 = scmp.eq.s32.totalorder %s25_s12, 0  ;;  %p36_p10 = scmp.eq.s32.totalorder %s1211_s18, 0 }
  0x41   : > { %p1564_p5 = scmp.eq.s32.totalorder %s1277_s19, 1  ;;  %p979_p9 = scmp.lt.s32.totalorder %s1211_s18, 2 }
  0x42   : > { %s1375_s14 = scalar_select %p26_p13, %s1207_s17, %s28_s13  }
  0x43   : > { %p37_p3 = por %p36_p10, %p35_p6  ;;  %p1379_p7 = por %p1564_p5, %p35_p6 }
  0x44   : > { %s183_s26 = sand.u32 1, %s1207_s17   ;;  %s860_s28 = sshll.u32 %s1211_s18, 7 }
  0x45   : > { %s1565_s20 = scalar_select %p1379_p7, 1, 0 }
  0x46   : > { %s859_s24 = sshll.u32 %s183_s26, 3  ;;  %s1389_s30 = scalar_lea.hbm %s1552_s0, %s860_s28 }
  0x47   : > { %s187_s5 = scalar_lea.vmem [#allocation3], %s859_s24  ;;  %p1393_p11 = pnand %p979_p9, %p37_p3 }
  0x48   : > { %s194_s6 = sshll.u32 %s187_s5, 4  ;;  %s184_s7 = scalar_lea.sflag [#allocation4], %s183_s26  ;;  %s1391_s6 = int_to_ptr.vmem [resolvable:$true] %s194_s6 }
  0x49   : > { %s1111_s8 = scalar_lea.hbm %s1389_s30, 128  ;;  %p1113_p0 = pneg %p1393_p11 }
  0x4a   : > { %p1112_p12 = scmp.ne.s32.totalorder %s1389_s30, %s1111_s8  ;;  %s1116_s12 = scalar_lea.hbm %s1552_s0, 256 }
  0x4b   : > { %p1117_p13 = scmp.lt.u32.totalorder %s1389_s30, %s1552_s0  ;;  %p1118_p6 = scmp.lt.u32.totalorder %s1116_s12, %s1111_s8 }
  0x4c   : > { %p1114_p2 = pnand %p1113_p0, %p1112_p12  ;;  %p1120_p3 = scmp.lt.u32.totalorder %s1111_s8, %s1389_s30 }
  0x4d   : > { %p1119_p10 = por %p1118_p6, %p1117_p13 }
  0x4e   : > { %p1115_p1 = pneg %p1114_p2 }
  0x4f   : > { %p1121_p5 = por %p1120_p3, %p1119_p10 }
  0x51   : > { %p1122_p9 = pnand %p1121_p5, %p1115_p1 }
  0x53   : > { %1125 = shalt.err (!%p1122_p9)
}
  0x54   : > { %s1126_s26 = scalar_lea.vmem %s1391_s6, 128  ;;  %s1219_s28 = smov [#allocation3]  }
  0x55   : > { %p1127_p12 = scmp.ne.s32.totalorder %s1391_s6, %s1126_s26  ;;  %s1131_s27 = sshll.u32 %s1219_s28, 4  ;;  %s1132_s27 = int_to_ptr.vmem [resolvable:$false] %s1131_s27 }
  0x56   : > { %s1133_s29 = scalar_lea.vmem %s1132_s27, 256  ;;  %p1134_p4 = scmp.lt.s32.totalorder %s1391_s6, %s1132_s27 }
  0x57   : > { %p1129_p2 = pnand %p1127_p12, %p1113_p0  ;;  %p1135_p13 = scmp.lt.s32.totalorder %s1133_s29, %s1126_s26 }
  0x59   : > { %p1130_p7 = pneg %p1129_p2  ;;  %p1136_p6 = por %p1135_p13, %p1134_p4 }
  0x5b   : > { %p1137_p10 = pnand %p1136_p6, %p1130_p7 }
  0x5d   : > { %1140 = shalt.err (!%p1137_p10)
}
  0x5e   : > { %972 = dma.hbm_to_vmem [thread:$0]  (!%p1393_p11), %s1389_s30, 128, %s1391_s6, %s184_s7  }
  0x5f   : > { %203 = sbr.rel (%p1296_p8) target bundleno = 1565 (0x61d), region = 36  ;;  %s1425_s5 = sand.u32 (!%p1296_p8), 1, %s1203_s16  }
  0x60   : > { %s862_s8 = sshll.u32 (!%p1296_p8), %s1425_s5, 3  ;;  %s206_s9 = scalar_lea.sflag (!%p1296_p8), [#allocation4], %s1425_s5 }
  0x61   : > { %s209_s10 = scalar_lea.vmem (!%p1296_p8), [#allocation3], %s862_s8  ;;  %p1567_p4 = scmp.ne.s32.totalorder (!%p1296_p8), %s1560_s21, 0 }
  0x66   : > { %1186 = dma.done.wait (%p1567_p4), %s206_s9, 128  }
  0x67   : > { %1188 = vsyncadd (%p1567_p4), %s206_s9, 4294967168  ;;  %p1568_p7 = scmp.eq.s32.totalorder %s1277_s19, 0 }
  0x69   : > { %1190 = dma.done.wait (%p1568_p7), [#allocation7], 1152   ;;  %p1569_p8 = pmov %p1568_p7 }
  0x6a   : > { %v1220_v0 = vmov 0   ;;  %v1031_v1 = vld [vmem:[#allocation6 + $0x4] ss:$8 sps:$4 sm:$0xff]   ;;  %v1033_v2 = vld [vmem:[#allocation6] ss:$8 sps:$4 sm:$0xff]   ;;  %v243_v7 = vld [vmem:[%s209_s10] sm:$0xff] }
  0x6b   : > { %1192 = vsyncadd (%p1569_p8), [#allocation7], 4294966144  ;;  %317 = vmatprep.mubr.bf16.mxu0 %v1220_v0  ;;  %285 = vmatprep.subr.bf16.mxu0 %v1031_v1  ;;  %v1034_v3 = vld [vmem:[#allocation6 + $0x14] ss:$8 sps:$4 sm:$0xff]   ;;  %v1036_v4 = vld [vmem:[#allocation6 + $0x10] ss:$8 sps:$4 sm:$0xff]   ;;  %v244_v8 = vpack.c.bf16 %v243_v7, %v243_v7 }
  0x6c   : > { %286 = vmatpush1.bf16.msra.mxu0 %v1033_v2  ;;  %v1037_v5 = vld [vmem:[#allocation6 + $0x24] ss:$8 sps:$4 sm:$0xff]   ;;  %v1039_v6 = vld [vmem:[#allocation6 + $0x20] ss:$8 sps:$4 sm:$0xff]   ;;  %vm281_vm0 = vcmask 392192   ;;  %v1221_v9 = vmov 0.0  }
  0x6d   : > { %287 = vmatprep.subr.bf16.mxu0 %v1034_v3  ;;  %904 = vmatprep.subr.bf16.mxu1 %v1221_v9  ;;  %vm1222_vm1 = vmmov 0   ;;  %s1223_s21 = smov 80   ;;  %s1224_s23 = smov 112   ;;  %vm333_vm2 = vcmask 130048   ;;  %vm380_vm3 = vcmask 64512   ;;  %vm398_vm4 = vcmask 1043456  }
  0x6e   : > { %906 = vmatprep.mubr.msk.bf16.mxu1 %vm1222_vm1, %v1221_v9  ;;  %s1225_s30 = smov 64   ;;  %s1226_s6 = smov 48   ;;  %vm558_vm5 = vcmask 261248   ;;  %vm672_vm6 = vcmask 392448  }
  0x6f   : > { %s1227_s25 = smov 96   ;;  %s1228_s7 = smov 32  }
  0x70   : > { %288 = vmatpush1.bf16.msra.mxu0 %v1036_v4  ;;  %s1229_s12 = smov 16   ;;  %s885_s26 = sshll.u32 %s1277_s19, 7 }
  0x71   : > { %289 = vmatprep.subr.bf16.mxu0 %v1037_v5  ;;  %s241_s28 = scalar_lea.vmem [#allocation9], %s862_s8  ;;  %s1507_s10 = scalar_lea.hbm %s1556_s4, %s885_s26 }
  0x72   : > { %s765_s27 = sshll.u32 %s241_s28, 4  ;;  %s752_s19 = scalar_lea.sflag [#allocation5], %s1425_s5  ;;  %s1509_s27 = int_to_ptr.vmem [resolvable:$true] %s765_s27 }
  0x73   : > { %s1141_s8 = scalar_lea.vmem %s1509_s27, 128  ;;  %p1570_p0 = scmp.ne.s32.totalorder %s1565_s20, 0 }
  0x74   : > { %290 = vmatpush1.bf16.msra.mxu0 %v1039_v6  ;;  %p1142_p11 = scmp.ne.s32.totalorder %s1509_s27, %s1141_s8 }
  0x75   : > { %916 = vmatprep.subr.bf16.mxu0 %v1221_v9 }
  0x76   : > { %p1143_p1 = pnand %p1142_p11, %p1570_p0 }
  0x77   : > { %872 = vmatmul.mubr.msk.bf16.vlgmr.msra.gmra.mrb[0].mxu0 %vm281_vm0, %v244_v8 }
  0x78   : > { %918 = vmatprep.mubr.msk.bf16.mxu0 %vm1222_vm1, %v1221_v9  ;;  %p1144_p3 = pneg %p1143_p1 }
 0x14a   : > { %v319_v10 = vpop.f32.mrb[0].mxu0 }
 0x14b   : > { %v326_v11 = vmul.f32 0.25, %v319_v10  ;;  %v1446_v12 = vpack.c.bf16 %v319_v10, %v319_v10  ;;  %v1448_v13 = vpop.f32.mrb[1].mxu0  ;;  %v1040_v10 = vld [vmem:[#allocation8] sm:$0xff]  }
 0x14c   : > { %v323_v14 = vpop.f32.mrb[2].mxu0  ;;  %v329_v3 = vpack.c.bf16 %v1448_v13, %v1448_v13 }
 0x14d   : > { %v327_v15 = vpack.c.bf16 %v326_v11, %v326_v11  ;;  %331 = vrot.lane.b32.xlu0 %v1446_v12, %s1223_s21  ;;  %v324_v16 = vpop.f32.mrb[3].mxu0  ;;  %s1230_s21 = smov [#allocation9]  }
 0x14e   : > { %v626_v6 = vsel %vm398_vm4, %v329_v3, 0  ;;  %v1042_v16 = vld [vmem:[#allocation8 + $0x10] sm:$0xff]  }
 0x14f   : > { %444 = vrot.lane.b32.xlu1 %v327_v15, %s1224_s23  ;;  %s1145_s23 = sshll.u32 %s1230_s21, 4  ;;  %s1146_s23 = int_to_ptr.vmem [resolvable:$false] %s1145_s23 }
 0x150   : > { %p1148_p5 = scmp.lt.s32.totalorder %s1509_s27, %s1146_s23 }
 0x151   : > { %446 = vrot.lane.b32.xlu0 %v1446_v12, %s1225_s30  ;;  %s1147_s30 = scalar_lea.vmem %s1146_s23, 256 }
 0x152   : > { %p1149_p9 = scmp.lt.s32.totalorder %s1147_s30, %s1141_s8 }
 0x153   : > { %562 = vrot.lane.b32.xlu1 %v1446_v12, %s1226_s6 }
 0x154   : > { %p1150_p12 = por %p1149_p9, %p1148_p5 }
 0x155   : > { %560 = vrot.lane.b32.xlu0 %v327_v15, %s1227_s25 }
 0x156   : > { %p1151_p2 = pnand %p1150_p12, %p1144_p3 }
 0x1bf   : > { %v332_v17 = vpop.permute.xlu0 %331 }
 0x1c0   : > { %v338_v18 = vsel %vm333_vm2, %v332_v17, 0 }
 0x1c1   : > { %905 = vmatpush3.bf16.xpose.msra.mxu1 %v338_v18  ;;  %v445_v19 = vpop.permute.xlu1 %444 }
 0x1c2   : > { %910 = vmatprep.subr.bf16.mxu1 %v1221_v9 }
 0x1c3   : > { %v447_v20 = vpop.permute.xlu0 %446 }
 0x1c4   : > { %v452_v21 = vsel %vm333_vm2, %v447_v20, 0 }
 0x1c5   : > { %917 = vmatpush3.bf16.xpose.msra.mxu0 %v452_v21  ;;  %v563_v22 = vpop.permute.xlu1 %562 }
 0x1c6   : > { %928 = vmatprep.subr.bf16.mxu0 %v1221_v9  ;;  %v568_v23 = vsel %vm333_vm2, %v563_v22, 0 }
 0x1c7   : > { %v561_v24 = vpop.permute.xlu0 %560 }
 0x1c8   : > { %907 = vmatmul.mubr.msk.bf16.vlgmr.msra.gmra.mrb[0].mxu1 %vm333_vm2, %v327_v15  ;;  %v1041_v15 = vld [vmem:[#allocation8 + $0x8] sm:$0xff]  }
 0x1c9   : > { %912 = vmatprep.mubr.msk.bf16.mxu1 %vm1222_vm1, %v1221_v9 }
 0x1cc   : > { %919 = vmatmul.mubr.msk.bf16.vlgmr.msra.gmra.mrb[4].mxu0 %vm333_vm2, %v445_v19 }
 0x1cd   : > { %929 = vmatpush3.bf16.xpose.msra.mxu0 %v568_v23  ;;  %930 = vmatprep.mubr.msk.bf16.mxu0 %vm1222_vm1, %v1221_v9 }
 0x1ce   : > { %940 = vmatprep.subr.bf16.mxu0 %v1221_v9 }
 0x1d4   : > { %931 = vmatmul.mubr.msk.bf16.vlgmr.msra.gmra.mrb[8].mxu0 %vm333_vm2, %v561_v24 }
 0x1d5   : > { %946 = vmatprep.mubr.msk.bf16.mxu0 %vm1222_vm1, %v1221_v9  ;;  %941 = vmatpush3.bf16.msra.mxu0 %v1040_v10 }
 0x1d6   : > { %942 = vmatprep.subr.bf16.mxu0 %v1221_v9 }
 0x1d9   : > { %943 = vmatpush3.bf16.msra.mxu0 %v1041_v15 }
 0x1da   : > { %944 = vmatprep.subr.bf16.mxu0 %v1221_v9 }
 0x1dd   : > { %945 = vmatpush3.bf16.msra.mxu0 %v1042_v16 }
 0x29b   : > { %v374_v25 = vpop.f32.mrb[0].mxu1 }
 0x29c   : > { %v908_v26 = vpop.f32.mrb[1].mxu1  ;;  %v381_v27 = vsel %vm380_vm3, %v374_v25, -inf }
 0x29d   : > { %382 = vmax.xlane.f32.xlu1 %v381_v27  ;;  %v377_v28 = vpop.f32.mrb[2].mxu1 }
 0x29e   : > { %v909_v29 = vpop.f32.mrb[3].mxu1  ;;  %v879_v28 = vld [vmem:[%s1555_s3] ss:$0 sm:$0xff] }
 0x29f   : > { %v488_v30 = vpop.f32.mrb[4].mxu0 }
 0x2a0   : > { %v920_v31 = vpop.f32.mrb[5].mxu0  ;;  %v494_v32 = vsel %vm380_vm3, %v488_v30, -inf }
 0x2a1   : > { %495 = vmax.xlane.f32.xlu0 %v494_v32  ;;  %v491_v33 = vpop.f32.mrb[6].mxu0 }
 0x2a2   : > { %v921_v34 = vpop.f32.mrb[7].mxu0 }
 0x2a7   : > { %v604_v35 = vpop.f32.mrb[8].mxu0 }
 0x2a8   : > { %v932_v36 = vpop.f32.mrb[9].mxu0  ;;  %v610_v37 = vsel %vm380_vm3, %v604_v35, -inf }
 0x2a9   : > { %611 = vmax.xlane.f32.xlu0 %v610_v37  ;;  %v607_v38 = vpop.f32.mrb[10].mxu0 }
 0x2aa   : > { %v933_v39 = vpop.f32.mrb[11].mxu0 }
 0x32a   : > { %v383_v40 = vpop.xlane.xlu1 %382 }
 0x32b   : > { %v384_v41 = vsub.f32 %v374_v25, %v383_v40 }
 0x32d   : > { %v385_v42 = vmul.f32 1.442695, %v384_v41 }
 0x32e   : > { %v496_v43 = vpop.xlane.xlu0 %495 }
 0x32f   : > { %1043 = vpow2.f32 %v385_v42  ;;  %v497_v44 = vsub.f32 %v488_v30, %v496_v43 }
 0x331   : > { %v498_v45 = vmul.f32 1.442695, %v497_v44 }
 0x333   : > { %1045 = vpow2.f32 %v498_v45 }
 0x336   : > { %v612_v46 = vpop.xlane.xlu0 %611 }
 0x337   : > { %v613_v47 = vsub.f32 %v604_v35, %v612_v46 }
 0x339   : > { %v1044_v48 = vpop.eup %1043  ;;  %v614_v49 = vmul.f32 1.442695, %v613_v47 }
 0x33a   : > { %v387_v50 = vsel %vm380_vm3, %v1044_v48, 0.0 }
 0x33b   : > { %1047 = vpow2.f32 %v614_v49  ;;  %388 = vadd.xlane.f32.xlu1 %v387_v50 }
 0x33d   : > { %v1046_v51 = vpop.eup %1045 }
 0x33e   : > { %v500_v52 = vsel %vm380_vm3, %v1046_v51, 0.0 }
 0x33f   : > { %501 = vadd.xlane.f32.xlu0 %v500_v52 }
 0x345   : > { %v1048_v53 = vpop.eup %1047 }
 0x346   : > { %v616_v54 = vsel %vm380_vm3, %v1048_v53, 0.0 }
 0x347   : > { %617 = vadd.xlane.f32.xlu1 %v616_v54 }
 0x355   : > { %393 = vrot.lane.b32.xlu0 %v1446_v12, %s1228_s7 }
 0x358   : > { %506 = vrot.lane.b32.xlu1 %v1446_v12, %s1229_s12 }
 0x3c8   : > { %v389_v55 = vpop.xlane.xlu1 %388 }
 0x3c9   : > { %1049 = vrcp.f32 %v389_v55 }
 0x3cc   : > { %v502_v56 = vpop.xlane.xlu0 %501 }
 0x3cd   : > { %1051 = vrcp.f32 %v502_v56 }
 0x3d0   : > { %v394_v57 = vpop.permute.xlu0 %393 }
 0x3d1   : > { %v400_v58 = vsel %vm398_vm4, %v394_v57, 0 }
 0x3d2   : > { %911 = vmatpush3.bf16.msra.mxu1 %v400_v58 }
 0x3d3   : > { %v1050_v59 = vpop.eup %1049  ;;  %922 = vmatprep.subr.bf16.mxu1 %v1221_v9 }
 0x3d4   : > { %v391_v60 = vmul.f32 %v1050_v59, %v1044_v48  ;;  %v618_v61 = vpop.xlane.xlu1 %617 }
 0x3d5   : > { %1053 = vrcp.f32 %v618_v61 }
 0x3d6   : > { %v392_v62 = vpack.c.bf16 %v391_v60, %v391_v60 }
 0x3d7   : > { %v1052_v63 = vpop.eup %1051 }
 0x3d8   : > { %v507_v0 = vpop.permute.xlu1 %506  ;;  %913 = vmatmul.mubr.msk.bf16.vlgmr.msra.gmra.mrb[4].mxu1 %vm380_vm3, %v392_v62  ;;  %v504_v2 = vmul.f32 %v1052_v63, %v1046_v51 }
 0x3d9   : > { %v512_v1 = vsel %vm398_vm4, %v507_v0, 0  ;;  %924 = vmatprep.mubr.msk.bf16.mxu1 %vm1222_vm1, %v1221_v9 }
 0x3da   : > { %923 = vmatpush3.bf16.msra.mxu1 %v512_v1  ;;  %v505_v4 = vpack.c.bf16 %v504_v2, %v504_v2 }
 0x3db   : > { %934 = vmatprep.subr.bf16.mxu1 %v1221_v9 }
 0x3df   : > { %v1054_v5 = vpop.eup %1053 }
 0x3e0   : > { %925 = vmatmul.mubr.msk.bf16.vlgmr.msra.gmra.mrb[8].mxu1 %vm380_vm3, %v505_v4  ;;  %v620_v7 = vmul.f32 %v1054_v5, %v1048_v53 }
 0x3e1   : > { %935 = vmatpush3.bf16.msra.mxu1 %v626_v6  ;;  %936 = vmatprep.mubr.msk.bf16.mxu1 %vm1222_vm1, %v1221_v9 }
 0x3e2   : > { %v621_v8 = vpack.c.bf16 %v620_v7, %v620_v7 }
 0x3e8   : > { %937 = vmatmul.mubr.msk.bf16.vlgmr.msra.gmra.mrb[12].mxu1 %vm380_vm3, %v621_v8 }
 0x4ab   : > { %v436_v11 = vpop.f32.mrb[4].mxu1 }
 0x4ac   : > { %442 = vst.msk [vmem:[#allocation2] sm:$0xff] %vm333_vm2, %v436_v11  ;;  %v914_v12 = vpop.f32.mrb[5].mxu1 }
 0x4ad   : > { %v439_v13 = vpop.f32.mrb[6].mxu1 }
 0x4ae   : > { %v915_v14 = vpop.f32.mrb[7].mxu1 }
 0x4b3   : > { %v548_v17 = vpop.f32.mrb[8].mxu1 }
 0x4b4   : > { %555 = vrot.lane.b32.xlu1 %v548_v17, %s1229_s12  ;;  %v926_v18 = vpop.f32.mrb[9].mxu1 }
 0x4b5   : > { %v551_v19 = vpop.f32.mrb[10].mxu1 }
 0x4b6   : > { %v927_v20 = vpop.f32.mrb[11].mxu1 }
 0x4bb   : > { %v662_v21 = vpop.f32.mrb[12].mxu1 }
 0x4bc   : > { %669 = vrot.lane.b32.xlu0 %v662_v21, %s1228_s7  ;;  %v938_v22 = vpop.f32.mrb[13].mxu1 }
 0x4bd   : > { %v665_v23 = vpop.f32.mrb[14].mxu1 }
 0x4be   : > { %v939_v24 = vpop.f32.mrb[15].mxu1 }
 0x526   : > { %v556_v25 = vpop.permute.xlu1 %555 }
 0x527   : > { %559 = vst.msk [vmem:[#allocation2] sm:$0xff] %vm558_vm5, %v556_v25 }
 0x52e   : > { %v670_v9 = vpop.permute.xlu0 %669 }
 0x52f   : > { %673 = vst.msk [vmem:[#allocation2] sm:$0xff] %vm672_vm6, %v670_v9 }
 0x536   : > { %v674_v26 = vld [vmem:[#allocation2] sm:$0xff] }
 0x537   : > { %v675_v27 = vpack.c.bf16 %v674_v26, %v674_v26 }
 0x539   : > { %947 = vmatmul.mubr.msk.bf16.vlgmr.msra.gmra.mrb[12].mxu0 %vm281_vm0, %v675_v27 }
 0x60c   : > { %v744_v29 = vpop.f32.mrb[12].mxu0 }
 0x60d   : > { %v745_v30 = vadd.f32 %v879_v28, %v744_v29  ;;  %v948_v31 = vpop.f32.mrb[13].mxu0 }
 0x60e   : > { %v747_v32 = vpop.f32.mrb[14].mxu0 }
 0x60f   : > { %v949_v33 = vpop.f32.mrb[15].mxu0  ;;  %750 = vst.msk [vmem:[%s241_s28] sm:$0xff] %vm281_vm0, %v745_v30 }
 0x610   : > { %1154 = shalt.err (!%p1151_p2)
}
 0x611   : > { %s1155_s5 = scalar_lea.hbm %s1507_s10, 128  ;;  %s1159_s7 = scalar_lea.hbm %s1556_s4, 256 }
 0x612   : > { %p1156_p13 = scmp.ne.s32.totalorder %s1507_s10, %s1155_s5  ;;  %p1160_p4 = scmp.lt.u32.totalorder %s1507_s10, %s1556_s4 }
 0x613   : > { %p1161_p7 = scmp.lt.u32.totalorder %s1159_s7, %s1155_s5  ;;  %p1163_p11 = scmp.lt.u32.totalorder %s1155_s5, %s1507_s10 }
 0x614   : > { %p1157_p6 = pnand %p1156_p13, %p1570_p0 }
 0x615   : > { %p1162_p8 = por %p1161_p7, %p1160_p4 }
 0x616   : > { %p1158_p10 = pneg %p1157_p6 }
 0x617   : > { %p1164_p1 = por %p1163_p11, %p1162_p8 }
 0x619   : > { %p1165_p3 = pnand %p1164_p1, %p1158_p10 }
 0x61b   : > { %1168 = shalt.err (!%p1165_p3)
}
 0x61c   : > { %960 = dma.vmem_to_hbm [thread:$0]  (%p1570_p0), %s1509_s27, 128, %s1507_s10, %s752_s19  }
 0x61d PF: > { %s777_s24 = sand.u32 1, %s1199_s15   ;;  %p1571_p5 = scmp.ne.s32.totalorder %s1561_s22, 0 }
 0x61e   : > { %p1572_p9 = scmp.ge.s32.totalorder %s1211_s18, 2  ;;  %s778_s26 = scalar_lea.sflag [#allocation5], %s777_s24 }
 0x620   : > { %p974_p12 = pnand %p1572_p9, %p1571_p5 }
 0x622   : > { %1194 = dma.done.wait (!%p974_p12), %s778_s26, 128  }
 0x623   : > { %1196 = vsyncadd (!%p974_p12), %s778_s26, 4294967168  ;;  %p18_p2 = scmp.ge.s32.totalorder %s1366_s11, 4   ;;  %s1573_s15 = smov %s1203_s16 }
 0x624   : > { %s1574_s16 = smov %s1207_s17  ;;  %s1575_s17 = smov %s1375_s14 }
 0x625   : > { %s1576_s18 = smov %s1366_s11  ;;  %20 = sbr.rel (!%p18_p2) target bundleno = 6 (0x6), region = 89 }
 0x62c   :  { %783 = vsyncpa [#allocation4], 1 }
 0x62d   :  { %785 = vsyncpa [#allocation4 + $0x1], 1 }
 0x62e   :  { %786 = vsyncpa [#allocation7], 1 }
 0x62f   :  { %787 = vsyncpa [#allocation5], 1 }
 0x630   :  { %789 = vsyncpa [#allocation5 + $0x1], 1 }

</bundles_post_ra>
